<compile_context>
chip_gen: v6e
topology: v6e:2x2x1
jax: 0.10.0
libtpu: 0.0.40
codegen_flags: <defaults>
</compile_context>

<pallas_src>
import jax
import jax.numpy as jnp
from jax.experimental import pallas as pl
from jax.experimental.pallas import tpu as pltpu


def rbf_poly_kernel(x_ref, cneg2_ref, c2adj_ref, gamma_ref, wt_ref, pt_ref, o_ref):
    # x_ref:     (D+1, TN)  feature-major x tile, last row is all ones
    # cneg2_ref: (C, D+1)   -2 * centers, zero-padded column for the ones row
    # c2adj_ref: (C, 1)     ||c||^2 - 1   (the -1 cancels the ones row in ||x_aug||^2)
    # gamma_ref: (C, 1)     -(shape_c)^2  (always <= 0)
    # wt_ref:    (O, C)     RBF coefficients, transposed
    # pt_ref:    (O, D+1)   poly coefficients [lin..., const], replicated over O
    # o_ref:     (O, TN)

    x_aug = x_ref[...]                                                   # (D+1, TN)

    # ||x||^2 + 1  (sublane reduce over D+1 rows, cheap XLU work)
    x2p1 = jnp.sum(x_aug * x_aug, axis=0, keepdims=True)                 # (1, TN)

    # -2 * c . x   (MXU, K = D+1; zero column makes the ones row a no-op)
    cx = jnp.dot(cneg2_ref[...], x_aug,
                 preferred_element_type=jnp.float32)                     # (C, TN)

    # squared pairwise distances: (||c||^2 - 1) + (||x||^2 + 1) - 2 c.x
    d2 = c2adj_ref[...] + x2p1 + cx                                      # (C, TN)

    # gaussian kernel: exp(gamma * max(d2, 0)) == exp(min(gamma * d2, 0)) since gamma <= 0
    phi = jnp.exp(jnp.minimum(gamma_ref[...] * d2, 0.0))                 # (C, TN)

    # rbf output (O, TN) + degree-1 poly (const folded via the ones row of x_aug)
    out = jnp.dot(wt_ref[...], phi, preferred_element_type=jnp.float32)
    out = out + jnp.dot(pt_ref[...], x_aug, preferred_element_type=jnp.float32)

    o_ref[...] = out.astype(o_ref.dtype)


def rbf_poly_free_all(x, centers, shapes, w, poly_coefs, *, tile_n=512):
    """x: (N, D), centers: (C, D), shapes: (C,), w: (C, O), poly_coefs: (D+1, 1).

    Returns (N, O) float32. Tail samples (N % tile_n) are handled by zero-padding.
    """
    N, D = x.shape
    C, _ = centers.shape
    O = w.shape[1]

    n_tiles = max(int(pl.cdiv(N, tile_n)), 1)
    Np = n_tiles * tile_n

    # ---- one-time (XLA) input prep: feature-major x with a ones row, zero-padded tail
    x_aug = jnp.zeros((D + 1, Np), jnp.float32)
    x_aug = x_aug.at[D, :].set(1.0)
    x_aug = x_aug.at[:D, :N].set(x.astype(jnp.float32).T)

    # ---- grid-invariant precompute (hoisted out of the kernel)
    centers_f = centers.astype(jnp.float32)
    c_neg2 = jnp.concatenate(
        [-2.0 * centers_f, jnp.zeros((C, 1), jnp.float32)], axis=1)      # (C, D+1)
    c2_adj = jnp.sum(centers_f * centers_f, axis=1, keepdims=True) - 1.0  # (C, 1)
    gamma = -(shapes.astype(jnp.float32).reshape(C, 1) ** 2)              # (C, 1)
    w_t = w.astype(jnp.float32).T                                         # (O, C)
    p_row = jnp.concatenate(
        [poly_coefs[1:, 0], poly_coefs[0:1, 0]]).astype(jnp.float32)      # (D+1,) [lin..., const]
    p_t = jnp.tile(p_row[None, :], (O, 1))                                # (O, D+1)

    cost = pl.CostEstimate(
        flops=2 * Np * C * (D + 1) + 2 * Np * O * (C + D + 1),
        transcendentals=Np * C,
        bytes_accessed=4 * (Np * (D + 1) + Np * O + C * (D + 3) + O * (C + D + 1)),
    )

    out_t = pl.pallas_call(
        rbf_poly_kernel,
        out_shape=jax.ShapeDtypeStruct((O, Np), jnp.float32),
        grid_spec=pltpu.PrefetchScalarGridSpec(
            num_scalar_prefetch=0,
            grid=(n_tiles,),
            in_specs=[
                pl.BlockSpec((D + 1, tile_n), lambda i: (0, i)),  # x_aug, tiled along lanes
                pl.BlockSpec((C, D + 1), lambda i: (0, 0)),       # -2*centers (full, resident)
                pl.BlockSpec((C, 1), lambda i: (0, 0)),           # ||c||^2 - 1
                pl.BlockSpec((C, 1), lambda i: (0, 0)),           # gamma
                pl.BlockSpec((O, C), lambda i: (0, 0)),           # W^T
                pl.BlockSpec((O, D + 1), lambda i: (0, 0)),       # poly coefs
            ],
            out_specs=pl.BlockSpec((O, tile_n), lambda i: (0, i)),
        ),
        compiler_params=pltpu.CompilerParams(
            dimension_semantics=("parallel",)),
        cost_estimate=cost,
    )(x_aug, c_neg2, c2_adj, gamma, w_t, p_t)

    # back to sample-major (N, O), dropping the padded tail
    return out_t[:, :N].T


def reference(x, centers, shapes, w, poly_coefs):
    d2 = jnp.sum((x[:, None, :] - centers[None, :, :]) ** 2, axis=-1)
    phi = jnp.exp(-(shapes[None, :] ** 2) * d2)
    rbf = phi @ w
    poly = poly_coefs[0, 0] + x @ poly_coefs[1:, :]
    return rbf + poly


if __name__ == "__main__":
    # Module hyperparameters (deterministic synthetic init, no checkpoint load)
    input_dim = 4          # D
    num_centers = 32       # C
    output_dim = 2         # O
    degree = 1             # Poly degree -> basis size D+1
    left_lim, right_lim = 0.0, 1.0
    N = 1000               # non-multiple of tile_n to exercise the padded tail
    tile_n = 512           # -> 2 grid programs (keeps both v7x TCs busy)

    key = jax.random.PRNGKey(0)
    kx, kc, ks, kw, kp = jax.random.split(key, 5)

    x = jax.random.uniform(kx, (N, input_dim), dtype=jnp.float32)
    centers = left_lim + (right_lim - left_lim) * jax.random.uniform(
        kc, (num_centers, input_dim), dtype=jnp.float32)
    shapes = 1.0 + 0.5 * jax.random.uniform(ks, (num_centers,), dtype=jnp.float32)
    w = jax.random.normal(kw, (num_centers, output_dim), dtype=jnp.float32)
    poly_coefs = jax.random.normal(kp, (input_dim + 1, 1), dtype=jnp.float32)

    out = rbf_poly_free_all(x, centers, shapes, w, poly_coefs, tile_n=tile_n)
    out = jax.block_until_ready(out)

    ref = reference(x, centers, shapes, w, poly_coefs)
    assert out.shape == (N, output_dim)
    assert jnp.allclose(out, ref, atol=2e-4, rtol=2e-4), "mismatch vs reference"

    print("KERNEL_OK")
</pallas_src>

<mosaic_0001>
module attributes {stable_mosaic.version = 11 : i64} {
  func.func @rbf_poly_kernel(%arg0: i32, %arg1: memref<5x512xf32, #tpu.memory_space<vmem>>, %arg2: memref<32x5xf32, #tpu.memory_space<vmem>>, %arg3: memref<32x1xf32, #tpu.memory_space<vmem>>, %arg4: memref<32x1xf32, #tpu.memory_space<vmem>>, %arg5: memref<2x32xf32, #tpu.memory_space<vmem>>, %arg6: memref<2x5xf32, #tpu.memory_space<vmem>>, %arg7: memref<2x512xf32, #tpu.memory_space<vmem>>) attributes {dimension_semantics = [#tpu.dimension_semantics<parallel>], iteration_bounds = array<i64: 2>, scalar_prefetch = 0 : i64, scratch_operands = 0 : i64, tpu.core_type = #tpu.core_type<tc>, window_params = [{transform_indices = @transform_0, window_bounds = array<i64: 5, 512>}, {pipeline_mode = #tpu.pipeline_mode<synchronous>, transform_indices = @transform_1, window_bounds = array<i64: 32, 5>}, {pipeline_mode = #tpu.pipeline_mode<synchronous>, transform_indices = @transform_2, window_bounds = array<i64: 32, 1>}, {pipeline_mode = #tpu.pipeline_mode<synchronous>, transform_indices = @transform_3, window_bounds = array<i64: 32, 1>}, {pipeline_mode = #tpu.pipeline_mode<synchronous>, transform_indices = @transform_4, window_bounds = array<i64: 2, 32>}, {pipeline_mode = #tpu.pipeline_mode<synchronous>, transform_indices = @transform_5, window_bounds = array<i64: 2, 5>}, {transform_indices = @transform_6, window_bounds = array<i64: 2, 512>}]} {
    %c0 = arith.constant 0 : index
    %c0_0 = arith.constant 0 : index
    %0 = vector.load %arg1[%c0, %c0_0] : memref<5x512xf32, #tpu.memory_space<vmem>>, vector<5x512xf32>
    %1 = arith.mulf %0, %0 : vector<5x512xf32>
    %cst = arith.constant dense<0.000000e+00> : vector<512xf32>
    %2 = vector.multi_reduction <add>, %1, %cst [0] : vector<5x512xf32> to vector<512xf32>
    %3 = vector.shape_cast %2 : vector<512xf32> to vector<1x512xf32>
    %c0_1 = arith.constant 0 : index
    %c0_2 = arith.constant 0 : index
    %4 = vector.load %arg2[%c0_1, %c0_2] : memref<32x5xf32, #tpu.memory_space<vmem>>, vector<32x5xf32>
    %cst_3 = arith.constant dense<0.000000e+00> : vector<32x512xf32>
    %5 = tpu.matmul %4, %0, %cst_3 {dimension_numbers = #tpu.dot_dimension_numbers<[1], [0], [0], [1], [0, 0, 1, 1], [], []>} : vector<32x5xf32>, vector<5x512xf32>, vector<32x512xf32> -> vector<32x512xf32>
    %c0_4 = arith.constant 0 : index
    %c0_5 = arith.constant 0 : index
    %6 = vector.load %arg3[%c0_4, %c0_5] : memref<32x1xf32, #tpu.memory_space<vmem>>, vector<32x1xf32>
    %7 = vector.broadcast %6 : vector<32x1xf32> to vector<32x512xf32>
    %8 = vector.broadcast %3 : vector<1x512xf32> to vector<32x512xf32>
    %9 = arith.addf %7, %8 : vector<32x512xf32>
    %10 = arith.addf %9, %5 : vector<32x512xf32>
    %c0_6 = arith.constant 0 : index
    %c0_7 = arith.constant 0 : index
    %11 = vector.load %arg4[%c0_6, %c0_7] : memref<32x1xf32, #tpu.memory_space<vmem>>, vector<32x1xf32>
    %12 = vector.broadcast %11 : vector<32x1xf32> to vector<32x512xf32>
    %13 = arith.mulf %12, %10 : vector<32x512xf32>
    %cst_8 = arith.constant 0.000000e+00 : f32
    %14 = vector.broadcast %cst_8 : f32 to vector<32x512xf32>
    %15 = arith.minimumf %13, %14 : vector<32x512xf32>
    %16 = math.exp %15 : vector<32x512xf32>
    %c0_9 = arith.constant 0 : index
    %c0_10 = arith.constant 0 : index
    %17 = vector.load %arg5[%c0_9, %c0_10] : memref<2x32xf32, #tpu.memory_space<vmem>>, vector<2x32xf32>
    %cst_11 = arith.constant dense<0.000000e+00> : vector<2x512xf32>
    %18 = tpu.matmul %17, %16, %cst_11 {dimension_numbers = #tpu.dot_dimension_numbers<[1], [0], [0], [1], [0, 0, 1, 1], [], []>} : vector<2x32xf32>, vector<32x512xf32>, vector<2x512xf32> -> vector<2x512xf32>
    %c0_12 = arith.constant 0 : index
    %c0_13 = arith.constant 0 : index
    %19 = vector.load %arg6[%c0_12, %c0_13] : memref<2x5xf32, #tpu.memory_space<vmem>>, vector<2x5xf32>
    %cst_14 = arith.constant dense<0.000000e+00> : vector<2x512xf32>
    %20 = tpu.matmul %19, %0, %cst_14 {dimension_numbers = #tpu.dot_dimension_numbers<[1], [0], [0], [1], [0, 0, 1, 1], [], []>} : vector<2x5xf32>, vector<5x512xf32>, vector<2x512xf32> -> vector<2x512xf32>
    %21 = arith.addf %18, %20 : vector<2x512xf32>
    %c0_15 = arith.constant 0 : index
    %c0_16 = arith.constant 0 : index
    %22 = vector.load %arg7[%c0_15, %c0_16] : memref<2x512xf32, #tpu.memory_space<vmem>>, vector<2x512xf32>
    tpu.vector_store %arg7[%c0_15, %c0_16], %21 {strides = array<i32>} : memref<2x512xf32, #tpu.memory_space<vmem>>, vector<2x512xf32>,
    return
  }
  func.func @transform_0(%arg0: i32) -> (i32, i32) {
    %c0_i32 = arith.constant 0 : i32
    %c0_i32_0 = arith.constant 0 : i32
    return %c0_i32, %arg0 : i32, i32
  }
  func.func @transform_1(%arg0: i32) -> (i32, i32) {
    %c0_i32 = arith.constant 0 : i32
    %c0_i32_0 = arith.constant 0 : i32
    %c0_i32_1 = arith.constant 0 : i32
    return %c0_i32, %c0_i32_0 : i32, i32
  }
  func.func @transform_2(%arg0: i32) -> (i32, i32) {
    %c0_i32 = arith.constant 0 : i32
    %c0_i32_0 = arith.constant 0 : i32
    %c0_i32_1 = arith.constant 0 : i32
    return %c0_i32, %c0_i32_0 : i32, i32
  }
  func.func @transform_3(%arg0: i32) -> (i32, i32) {
    %c0_i32 = arith.constant 0 : i32
    %c0_i32_0 = arith.constant 0 : i32
    %c0_i32_1 = arith.constant 0 : i32
    return %c0_i32, %c0_i32_0 : i32, i32
  }
  func.func @transform_4(%arg0: i32) -> (i32, i32) {
    %c0_i32 = arith.constant 0 : i32
    %c0_i32_0 = arith.constant 0 : i32
    %c0_i32_1 = arith.constant 0 : i32
    return %c0_i32, %c0_i32_0 : i32, i32
  }
  func.func @transform_5(%arg0: i32) -> (i32, i32) {
    %c0_i32 = arith.constant 0 : i32
    %c0_i32_0 = arith.constant 0 : i32
    %c0_i32_1 = arith.constant 0 : i32
    return %c0_i32, %c0_i32_0 : i32, i32
  }
  func.func @transform_6(%arg0: i32) -> (i32, i32) {
    %c0_i32 = arith.constant 0 : i32
    %c0_i32_0 = arith.constant 0 : i32
    return %c0_i32, %arg0 : i32, i32
  }
}

</mosaic_0001>

<bundles_post_ra>
// kernel: tpu_custom_call.1
= control target key start
LH: loop header
LB: loop body
LE: loop exit
PB: predicated region body
PF: predicated region fallthrough
CT: control target
= control target key end

     0   :  { %11 = vsyncpa [#allocation3], 0  ;;  %s1427_s0 = inlined_call_operand.vmem [shape: f32[5,1024], index: 0, kind: input, shape index: {}]   ;;  %s1428_s1 = inlined_call_operand.vmem [shape: f32[32,5], index: 1, kind: input, shape index: {}]   ;;  %s1429_s2 = inlined_call_operand.vmem [shape: f32[32,1], index: 2, kind: input, shape index: {}]   ;;  %s1430_s3 = inlined_call_operand.vmem [shape: f32[32,1], index: 3, kind: input, shape index: {}]   ;;  %s1431_s4 = inlined_call_operand.vmem [shape: f32[2,32], index: 4, kind: input, shape index: {}]   ;;  %s1432_s5 = inlined_call_operand.vmem [shape: f32[2,5], index: 5, kind: input, shape index: {}]   ;;  %s1433_s6 = inlined_call_operand.hbm [shape: f32[2,1024], index: 6, kind: output, shape index: {}]  }
   0x1   :  { %13 = vsyncpa [#allocation3 + $0x1], 0  ;;  %s1241_s21 = smov 0   ;;  %s1243_s22 = smov 0  }
   0x2   :  { %s1245_s23 = smov 0   ;;  %s1247_s24 = smov 0  }
   0x3 LB: > { %s1262_s25 = sadd.s32 4294967295, %s1200_s24   ;;  %s1031_s26 = sadd.s32 4294967294, %s1200_s24   ;;  %s1200_s24 = sphi %s1247_s24, %s1439_s24   ;;  %s1196_s23 = sphi %s1245_s23, %s1438_s23   ;;  %s1192_s22 = sphi %s1243_s22, %s1437_s22   ;;  %s1188_s21 = sphi %s1241_s21, %s1436_s21  }
   0x4   : > { %s1266_s27 = sadd.s32 1, %s1200_s24   ;;  %s157_s28 = sadd.s32 1, %s1196_s23 }
   0x5   : > { %s154_s29 = ssub.s32 %s1200_s24, %s1266_s27  ;;  %p167_p0 = scmp.ne.s32.totalorder %s1196_s23, %s1192_s22 }
   0x6   : > { %p155_p1 = scmp.eq.s32.totalorder %s154_s29, 0  ;;  %p168_p2 = scmp.eq.s32.totalorder %s1262_s25, 1 }
   0x7   : > { %p173_p3 = scmp.ne.s32.totalorder %s1192_s22, %s1188_s21  ;;  %p174_p4 = scmp.eq.s32.totalorder %s1031_s26, 1 }
   0x8   : > { %s1277_s30 = scalar_select %p155_p1, %s1196_s23, %s157_s28  }
   0x9   : > { %p1279_p5 = por %p168_p2, %p167_p0  ;;  %p1283_p6 = por %p174_p4, %p173_p3 }
   0xa   : > { %p1034_p7 = scmp.ge.s32.totalorder %s1200_s24, 1  ;;  %p216_p8 = scmp.lt.s32.totalorder %s1200_s24, 3 }
   0xc   : > { %p217_p9 = pnand %p1034_p7, %p216_p8 }
   0xd   : > { %s1036_s9 = sshll.u32 (!%p217_p9), %s1262_s25, 2  ;;  %s243_s12 = sand.u32 (!%p217_p9), 1, %s1192_s22  }
   0xe   : > { %220 = sbr.rel (%p217_p9) target bundleno = 479 (0x1df), region = 44  ;;  %p247_p10 = scmp.lt.s32.totalorder (!%p217_p9), %s1036_s9, 7 }
   0xf   : > { %s1035_s13 = sshll.u32 (!%p217_p9), %s243_s12, 3  ;;  %s1063_s14 = sshll.u32 (!%p217_p9), %s1262_s25, 7 }
  0x10   : > { %s245_s15 = scalar_lea.vmem (!%p217_p9), [#allocation2], %s1035_s13  ;;  %s970_s19 = scalar_lea.hbm (!%p217_p9), %s1433_s6, %s1063_s14 }
  0x11   : > { %s972_s16 = sshll.u32 (!%p217_p9), %s245_s15, 4  ;;  %s958_s20 = scalar_lea.sflag (!%p217_p9), [#allocation3], %s243_s12  ;;  %s973_s16 = int_to_ptr.vmem [resolvable:$true] %s972_s16 }
  0x12   : > { %s1205_s28 = smov (!%p217_p9), [#allocation2]  }
  0x13   : > { %v1202_v0 = vmov 0.0   ;;  %v500_v1 = vld [vmem:[%s1429_s2 + $0x18] sm:$0xff]  ;;  %v1203_v2 = vmov 0   ;;  %v498_v3 = vld [vmem:[%s1429_s2 + $0x8] sm:$0xff]  ;;  %s1441_s9 = smov (!%p247_p10, %s1036_s9), 7  ;;  %v499_v4 = vld [vmem:[%s1429_s2 + $0x10] sm:$0xff] }
  0x14   : > { %383 = vmatprep.mubr.f32.mxu0 %v1202_v0  ;;  %472 = vmatprep.mubr.f32.mxu1 %v1202_v0  ;;  %v556_v5 = vld [vmem:[%s1430_s3 + $0x18] sm:$0xff]  ;;  %s1037_s18 = sshll.u32 %s1441_s9, 3  ;;  %vm261_vm0 = vcmask 1044480   ;;  %v290_v6 = vld [vmem:[%s1428_s1] sm:$0xff]  ;;  %vm294_vm1 = vcmask 39936   ;;  %v555_v15 = vld [vmem:[%s1430_s3 + $0x10] sm:$0xff] }
  0x15   : > { %1107 = vset.pattern.permute.xlu1 %v1203_v2  ;;  %1106 = vset.pattern.permute.xlu0 %v1203_v2  ;;  %s250_s26 = scalar_lea.vmem %s1427_s0, %s1037_s18  ;;  %v497_v16 = vld [vmem:[%s1429_s2] sm:$0xff]  ;;  %v291_v21 = vld [vmem:[%s1428_s1 + $0x8] sm:$0xff]  ;;  %v292_v24 = vld [vmem:[%s1428_s1 + $0x10] sm:$0xff]  ;;  %vm788_vm2 = vcmask 261120   ;;  %s1144_s29 = sshll.u32 %s1205_s28, 4  ;;  %s1145_s29 = int_to_ptr.vmem [resolvable:$false] %s1144_s29 }
  0x16   : > { %518 = vperm.xlu0 %1106, %v500_v1   ;;  %508 = vperm.xlu1 %1107, %v498_v3   ;;  %v254_v7 = vld [vmem:[%s250_s26 + $0x8] sm:$0x1f]  ;;  %v256_v8 = vld [vmem:[%s250_s26 + $0x18] sm:$0x1f]  ;;  %v253_v9 = vld [vmem:[%s250_s26] sm:$0x1f]  ;;  %p1147_p0 = scmp.lt.s32.totalorder %s973_s16, %s1145_s29 }
  0x17   : > { %v258_v10 = vmul.f32 %v254_v7, %v254_v7  ;;  %1038 = vmatprep.subr.msk.mxu0 %vm261_vm0, %v254_v7  ;;  %v260_v11 = vmul.f32 %v256_v8, %v256_v8  ;;  %1044 = vmatprep.subr.msk.mxu1 %vm261_vm0, %v256_v8  ;;  %v257_v12 = vmul.f32 %v253_v9, %v253_v9  ;;  %v255_v13 = vld [vmem:[%s250_s26 + $0x10] sm:$0x1f]  ;;  %v553_v22 = vld [vmem:[%s1430_s3] sm:$0xff]  ;;  %v554_v23 = vld [vmem:[%s1430_s3 + $0x8] sm:$0xff]  ;;  %s1140_s26 = scalar_lea.vmem %s973_s16, 128  ;;  %s1146_s25 = scalar_lea.vmem %s1145_s29, 256 }
  0x18   : > { %1039 = vmatpush1.msk.msra.mxu0 %vm261_vm0, %v253_v9  ;;  %v259_v14 = vmul.f32 %v255_v13, %v255_v13  ;;  %1045 = vmatpush1.msk.msra.mxu1 %vm261_vm0, %v255_v13  ;;  %v293_v25 = vld [vmem:[%s1428_s1 + $0x18] sm:$0xff]  ;;  %v642_v26 = vld [vmem:[%s1432_s5] sm:$0x3]  ;;  %p1141_p11 = scmp.ne.s32.totalorder %s973_s16, %s1140_s26  ;;  %p1148_p1 = scmp.lt.s32.totalorder %s1146_s25, %s1140_s26 }
  0x19   : > { %v269_v17 = vsel %vm261_vm0, %v258_v10, 0.0  ;;  %v283_v18 = vsel %vm261_vm0, %v260_v11, 0.0  ;;  %v262_v19 = vsel %vm261_vm0, %v257_v12, 0.0  ;;  %1040 = vmatmul.mubr.msk.f32.vlgmr.msra.gmra.mxu0 %vm294_vm1, %v290_v6  ;;  %1046 = vmatmul.mubr.msk.f32.vlgmr.msra.gmra.mxu1 %vm294_vm1, %v290_v6 }
  0x1a   : > { %513 = vperm.xlu0 %1106, %v499_v4   ;;  %574 = vperm.xlu1 %1107, %v556_v5   ;;  %v276_v20 = vsel %vm261_vm0, %v259_v14, 0.0  ;;  %v263_v27 = vrot.slane %v262_v19, 4  ;;  %v270_v28 = vrot.slane %v269_v17, 4  ;;  %v284_v35 = vrot.slane %v283_v18, 4  ;;  %p1142_p12 = pnand %p1141_p11, %p1279_p5  ;;  %p1149_p2 = por %p1148_p1, %p1147_p0 }
  0x1b   : > { %389 = vmatprep.mubr.f32.mxu0 %v1202_v0  ;;  %478 = vmatprep.mubr.f32.mxu1 %v1202_v0  ;;  %v277_v37 = vrot.slane %v276_v20, 4 }
  0x1c   : > { %1050 = vmatprep.subr.msk.mxu0 %vm261_vm0, %v254_v7  ;;  %1053 = vmatprep.subr.msk.mxu1 %vm261_vm0, %v256_v8  ;;  %v264_v29 = vadd.f32 %v263_v27, %v262_v19  ;;  %v271_v30 = vadd.f32 %v270_v28, %v269_v17  ;;  %v285_v39 = vadd.f32 %v284_v35, %v283_v18  ;;  %p1143_p13 = pneg %p1142_p12 }
  0x1d   : > { %1041 = vmatmul.mubr.msk.f32.gmra.mxu0 %vm294_vm1, %v291_v21  ;;  %1047 = vmatmul.mubr.msk.f32.gmra.mxu1 %vm294_vm1, %v291_v21  ;;  %v278_v43 = vadd.f32 %v277_v37, %v276_v20 }
  0x1e   : > { %569 = vperm.xlu1 %1107, %v555_v15   ;;  %503 = vperm.xlu0 %1106, %v497_v16   ;;  %v265_v31 = vrot.slane %v264_v29, 2  ;;  %v272_v34 = vrot.slane %v271_v30, 2  ;;  %v286_v45 = vrot.slane %v285_v39, 2  ;;  %p1150_p3 = pnand %p1149_p2, %p1143_p13 }
  0x1f   : > { %395 = vmatprep.mubr.f32.mxu0 %v1202_v0  ;;  %484 = vmatprep.mubr.f32.mxu1 %v1202_v0  ;;  %v279_v46 = vrot.slane %v278_v43, 2 }
  0x20   : > { %1051 = vmatpush1.msk.msra.mxu0 %vm261_vm0, %v253_v9  ;;  %1054 = vmatpush1.msk.msra.mxu1 %vm261_vm0, %v255_v13  ;;  %v266_v36 = vadd.f32 %v265_v31, %v264_v29  ;;  %v273_v38 = vadd.f32 %v272_v34, %v271_v30  ;;  %v287_v50 = vadd.f32 %v286_v45, %v285_v39 }
  0x21   : > { %1042 = vmatmul.mubr.msk.f32.gmra.mxu0 %vm294_vm1, %v292_v24  ;;  %1048 = vmatmul.mubr.msk.f32.gmra.mxu1 %vm294_vm1, %v292_v24  ;;  %v280_v52 = vadd.f32 %v279_v46, %v278_v43 }
  0x22   : > { %559 = vperm.xlu1 %1107, %v553_v22   ;;  %564 = vperm.xlu0 %1106, %v554_v23   ;;  %v267_v42 = vrot.slane %v266_v36, 1  ;;  %v274_v44 = vrot.slane %v273_v38, 1  ;;  %v288_v54 = vrot.slane %v287_v50, 1 }
  0x23   : > { %401 = vmatprep.mubr.f32.mxu0 %v1202_v0  ;;  %490 = vmatprep.mubr.f32.mxu1 %v1202_v0  ;;  %v281_v59 = vrot.slane %v280_v52, 1 }
  0x24   : > { %v268_v48 = vadd.f32 %v267_v42, %v266_v36  ;;  %v275_v51 = vadd.f32 %v274_v44, %v273_v38  ;;  %v289_v2 = vadd.f32 %v288_v54, %v287_v50 }
  0x25   : > { %1043 = vmatmul.mubr.msk.f32.gmra.mxu0 %vm294_vm1, %v293_v25  ;;  %1049 = vmatmul.mubr.msk.f32.gmra.mxu1 %vm294_vm1, %v293_v25  ;;  %v282_v6 = vadd.f32 %v281_v59, %v280_v52 }
  0x26   : > { %710 = vmatprep.mubr.f32.mxu0 %v1202_v0  ;;  %781 = vmatprep.mubr.f32.mxu1 %v1202_v0 }
  0x29   : > { %1052 = vmatmul.mubr.msk.f32.vlgmr.msra.gmra.mxu0 %vm294_vm1, %v642_v26  ;;  %1055 = vmatmul.mubr.msk.f32.vlgmr.msra.gmra.mxu1 %vm294_vm1, %v642_v26 }
  0x2a   : > { %856 = vmatprep.mubr.f32.mxu0 %v1202_v0  ;;  %927 = vmatprep.mubr.f32.mxu1 %v1202_v0 }
  0x91   : > { %v509_v32 = vpop.permute.xlu1 %508  ;;  %v1366_v33 = vpop.permute.xlu0 %518 }
  0x92   : > { %v525_v63 = vadd.f32 %v509_v32, %v268_v48  ;;  %v526_v5 = vadd.f32 %v509_v32, %v275_v51  ;;  %v528_v17 = vadd.f32 %v509_v32, %v289_v2  ;;  %v527_v24 = vadd.f32 %v509_v32, %v282_v6 }
  0x93   : > { %v533_v35 = vadd.f32 %v1366_v33, %v268_v48  ;;  %v535_v39 = vadd.f32 %v1366_v33, %v282_v6  ;;  %v534_v42 = vadd.f32 %v1366_v33, %v275_v51  ;;  %v536_v32 = vadd.f32 %v1366_v33, %v289_v2 }
  0x95   : > { %v1368_v40 = vpop.permute.xlu1 %574  ;;  %v514_v41 = vpop.permute.xlu0 %513 }
  0x96   : > { %v529_v9 = vadd.f32 %v514_v41, %v268_v48  ;;  %v530_v23 = vadd.f32 %v514_v41, %v275_v51  ;;  %v531_v26 = vadd.f32 %v514_v41, %v282_v6  ;;  %v532_v29 = vadd.f32 %v514_v41, %v289_v2 }
  0x99   : > { %v1370_v47 = vpop.permute.xlu1 %569  ;;  %v504_v49 = vpop.permute.xlu0 %503 }
  0x9a   : > { %v521_v53 = vadd.f32 %v504_v49, %v268_v48  ;;  %v522_v56 = vadd.f32 %v504_v49, %v275_v51  ;;  %v524_v14 = vadd.f32 %v504_v49, %v289_v2  ;;  %v523_v20 = vadd.f32 %v504_v49, %v282_v6 }
  0x9d   : > { %v1372_v55 = vpop.permute.xlu1 %559  ;;  %v565_v8 = vpop.permute.xlu0 %564 }
  0xd9   : > { %v385_v57 = vpop.f32.mrf.mxu0  ;;  %v474_v58 = vpop.f32.mrf.mxu1 }
  0xda   : > { %v537_v60 = vadd.f32 %v521_v53, %v385_v57  ;;  %v539_v43 = vadd.f32 %v523_v20, %v474_v58 }
  0xdb   : > { %v387_v61 = vpop.f32.mrf.mxu0  ;;  %v476_v62 = vpop.f32.mrf.mxu1 }
  0xdc   : > { %v577_v0 = vmul.f32 %v1372_v55, %v537_v60  ;;  %v538_v1 = vadd.f32 %v522_v56, %v387_v61  ;;  %v540_v31 = vadd.f32 %v524_v14, %v476_v62 }
  0xdd   : > { %v391_v3 = vpop.f32.mrf.mxu0  ;;  %v480_v4 = vpop.f32.mrf.mxu1 }
  0xde   : > { %v578_v7 = vmul.f32 %v1372_v55, %v538_v1  ;;  %v541_v10 = vadd.f32 %v525_v63, %v391_v3  ;;  %v593_v13 = vmin.f32 %v577_v0, 0.0  ;;  %v580_v48 = vmul.f32 %v1372_v55, %v540_v31 }
  0xdf   : > { %v393_v11 = vpop.f32.mrf.mxu0  ;;  %v482_v12 = vpop.f32.mrf.mxu1  ;;  %v543_v54 = vadd.f32 %v527_v24, %v480_v4 }
  0xe0   : > { %v581_v15 = vmul.f32 %v565_v8, %v541_v10  ;;  %v542_v16 = vadd.f32 %v526_v5, %v393_v11  ;;  %v594_v21 = vmin.f32 %v578_v7, 0.0  ;;  %v609_v30 = vmul.f32 1.442695, %v593_v13 }
  0xe1   : > { %v397_v18 = vpop.f32.mrf.mxu0  ;;  %v486_v19 = vpop.f32.mrf.mxu1  ;;  %v544_v45 = vadd.f32 %v528_v17, %v482_v12  ;;  %v583_v7 = vmul.f32 %v565_v8, %v543_v54 }
  0xe2   : > { %v545_v22 = vadd.f32 %v529_v9, %v397_v18  ;;  %v582_v25 = vmul.f32 %v565_v8, %v542_v16  ;;  %v597_v36 = vmin.f32 %v581_v15, 0.0  ;;  %v611_v44 = vmul.f32 1.442695, %v594_v21 }
  0xe3   : > { %v399_v27 = vpop.f32.mrf.mxu0  ;;  %v488_v28 = vpop.f32.mrf.mxu1  ;;  %v547_v49 = vadd.f32 %v531_v26, %v486_v19  ;;  %1108 = vpow2.f32 %v609_v30  ;;  %v584_v60 = vmul.f32 %v565_v8, %v544_v45  ;;  %v579_v15 = vmul.f32 %v1372_v55, %v539_v43 }
  0xe4   : > { %v585_v34 = vmul.f32 %v1370_v47, %v545_v22  ;;  %v546_v46 = vadd.f32 %v530_v23, %v399_v27  ;;  %v598_v41 = vmin.f32 %v582_v25, 0.0  ;;  %v548_v50 = vadd.f32 %v532_v29, %v488_v28 }
  0xe5   : > { %v403_v37 = vpop.f32.mrf.mxu0  ;;  %v492_v38 = vpop.f32.mrf.mxu1  ;;  %v617_v57 = vmul.f32 1.442695, %v597_v36  ;;  %1110 = vpow2.f32 %v611_v44  ;;  %v587_v0 = vmul.f32 %v1370_v47, %v547_v49  ;;  %v600_v16 = vmin.f32 %v584_v60, 0.0  ;;  %v641_v44 = vld [vmem:[%s1431_s4] sm:$0x3] }
  0xe6   : > { %v549_v52 = vadd.f32 %v533_v35, %v403_v37  ;;  %v601_v56 = vmin.f32 %v585_v34, 0.0  ;;  %v586_v59 = vmul.f32 %v1370_v47, %v546_v46  ;;  %v588_v51 = vmul.f32 %v1370_v47, %v548_v50 }
  0xe7   : > { %v405_v53 = vpop.f32.mrf.mxu0  ;;  %v494_v58 = vpop.f32.mrf.mxu1  ;;  %v551_v61 = vadd.f32 %v535_v39, %v492_v38  ;;  %v619_v63 = vmul.f32 1.442695, %v598_v41  ;;  %1112 = vpow2.f32 %v617_v57  ;;  %v603_v47 = vmin.f32 %v587_v0, 0.0 }
  0xe8   : > { %v589_v33 = vmul.f32 %v1368_v40, %v549_v52  ;;  %v550_v62 = vadd.f32 %v534_v42, %v405_v53  ;;  %v602_v1 = vmin.f32 %v586_v59, 0.0  ;;  %v625_v3 = vmul.f32 1.442695, %v601_v56 }
  0xe9   : > { %v591_v4 = vmul.f32 %v1368_v40, %v551_v61  ;;  %v552_v6 = vadd.f32 %v536_v32, %v494_v58  ;;  %v604_v10 = vmin.f32 %v588_v51, 0.0  ;;  %1114 = vpow2.f32 %v619_v63  ;;  %v712_v41 = vpop.f32.mrf.mxu0  ;;  %v783_v49 = vpop.f32.mrf.mxu1 }
  0xea   : > { %v605_v2 = vmin.f32 %v589_v33, 0.0  ;;  %v590_v5 = vmul.f32 %v1368_v40, %v550_v62  ;;  %v627_v9 = vmul.f32 1.442695, %v602_v1  ;;  %1116 = vpow2.f32 %v625_v3 }
  0xeb   : > { %v607_v12 = vmin.f32 %v591_v4, 0.0  ;;  %v592_v14 = vmul.f32 %v1368_v40, %v552_v6  ;;  %v599_v19 = vmin.f32 %v583_v7, 0.0  ;;  %v596_v8 = vmin.f32 %v580_v48, 0.0  ;;  %v714_v48 = vpop.f32.mrf.mxu0  ;;  %v785_v54 = vpop.f32.mrf.mxu1 }
  0xec   : > { %v633_v11 = vmul.f32 1.442695, %v605_v2  ;;  %v606_v13 = vmin.f32 %v590_v5, 0.0  ;;  %1118 = vpow2.f32 %v627_v9  ;;  %v631_v21 = vmul.f32 1.442695, %v604_v10 }
  0xed   : > { %v608_v18 = vmin.f32 %v592_v14, 0.0  ;;  %v637_v20 = vmul.f32 1.442695, %v607_v12  ;;  %v595_v23 = vmin.f32 %v579_v15, 0.0  ;;  %v629_v24 = vmul.f32 1.442695, %v603_v47 }
  0xee   : > { %v635_v17 = vmul.f32 1.442695, %v606_v13  ;;  %1120 = vpow2.f32 %v633_v11  ;;  %v623_v25 = vmul.f32 1.442695, %v600_v16  ;;  %v621_v55 = vmul.f32 1.442695, %v599_v19 }
  0xef   : > { %v639_v22 = vmul.f32 1.442695, %v608_v18  ;;  %v615_v26 = vmul.f32 1.442695, %v596_v8  ;;  %v613_v28 = vmul.f32 1.442695, %v595_v23  ;;  %v943_v53 = vlaneseq }
  0xf0   : > { %1122 = vpow2.f32 %v635_v17  ;;  %v1109_v40 = vpop.eup %1108  ;;  %v1204_v50 = vmov 1983009808  }
  0xf1   : > { %1124 = vpow2.f32 %v639_v22  ;;  %v941_v52 = vunpack.c.l.s4 %v1204_v50  ;;  %v944_v57 = vshrl.u32 %v943_v53, 7 }
  0xf2   : > { %1126 = vpow2.f32 %v637_v20  ;;  %v1111_v27 = vpop.eup %1110 }
  0xf3   : > { %1128 = vpow2.f32 %v631_v21  ;;  %v942_v56 = vunpack.c.0.s8 %v941_v52 }
  0xf4   : > { %1130 = vpow2.f32 %v629_v24  ;;  %v1113_v29 = vpop.eup %1112 }
  0xf5   : > { %1132 = vpow2.f32 %v623_v25  ;;  %v945_v61 = vsub.s32 %v942_v56, %v944_v57 }
  0xf6   : > { %1134 = vpow2.f32 %v621_v55  ;;  %v1115_v30 = vpop.eup %1114 }
  0xf7   : > { %1136 = vpow2.f32 %v615_v26  ;;  %v1117_v31 = vpop.eup %1116 }
  0xf8   : > { %1138 = vpow2.f32 %v613_v28 }
  0xf9   : > { %v1119_v34 = vpop.eup %1118 }
  0xfb   : > { %v1121_v35 = vpop.eup %1120 }
  0xfd   : > { %v1123_v36 = vpop.eup %1122 }
  0xfe   : > { %v1125_v37 = vpop.eup %1124  ;;  %816 = vmatprep.subr.mxu0 %v1123_v36 }
  0xff   : > { %v1127_v38 = vpop.eup %1126  ;;  %887 = vmatprep.subr.mxu1 %v1125_v37  ;;  %817 = vmatpush1.msra.mxu0 %v1121_v35 }
 0x100   : > { %v1129_v39 = vpop.eup %1128  ;;  %888 = vmatpush1.msra.mxu1 %v1127_v38  ;;  %818 = vmatprep.subr.mxu0 %v1119_v34 }
 0x101   : > { %v1131_v42 = vpop.eup %1130  ;;  %889 = vmatprep.subr.mxu1 %v1129_v39  ;;  %819 = vmatpush1.msra.mxu0 %v1117_v31 }
 0x102   : > { %v1133_v32 = vpop.eup %1132  ;;  %890 = vmatpush1.msra.mxu1 %v1131_v42  ;;  %820 = vmatprep.subr.mxu0 %v1115_v30 }
 0x103   : > { %v1135_v43 = vpop.eup %1134  ;;  %891 = vmatprep.subr.mxu1 %v1133_v32  ;;  %821 = vmatpush1.msra.mxu0 %v1113_v29 }
 0x104   : > { %v1137_v45 = vpop.eup %1136  ;;  %892 = vmatpush1.msra.mxu1 %v1135_v43  ;;  %822 = vmatprep.subr.mxu0 %v1111_v27 }
 0x105   : > { %v1139_v46 = vpop.eup %1138  ;;  %893 = vmatprep.subr.mxu1 %v1137_v45  ;;  %823 = vmatpush1.msra.mxu0 %v1109_v40 }
 0x106   : > { %894 = vmatpush1.msra.mxu1 %v1139_v46  ;;  %1056 = vmatmul.mubr.msk.f32.vlgmr.msra.gmra.mxu0 %vm788_vm2, %v641_v44 }
 0x107   : > { %1057 = vmatmul.mubr.msk.f32.vlgmr.msra.gmra.mxu1 %vm788_vm2, %v641_v44 }
 0x1c6   : > { %v858_v59 = vpop.f32.mrf.mxu0 }
 0x1c7   : > { %v929_v51 = vpop.f32.mrf.mxu1  ;;  %v859_v58 = vadd.f32 %v858_v59, %v712_v41 }
 0x1c8   : > { %v860_v33 = vpop.f32.mrf.mxu0  ;;  %v930_v63 = vadd.f32 %v929_v51, %v783_v49 }
 0x1c9   : > { %v861_v60 = vadd.f32 %v860_v33, %v714_v48  ;;  %v931_v62 = vpop.f32.mrf.mxu1 }
 0x1ca   : > { %v932_v0 = vadd.f32 %v931_v62, %v785_v54 }
 0x1cb   : > { %v938_v1 = vcombine.low %v859_v58, %v861_v60 }
 0x1cc   : > { %v939_v2 = vcombine.low %v930_v63, %v932_v0 }
 0x1cd   : > { %v946_v3 = vrot.slane %v938_v1, %v945_v61 }
 0x1ce   : > { %v953_v4 = vrot.slane %v939_v2, %v945_v61 }
 0x1d0   : > { %v954_v5 = vcombine.low %v946_v3, %v953_v4 }
 0x1d2   : > { %956 = vst [vmem:[%s245_s15] sm:$0xff] %v954_v5 }
 0x1d3   : > { %1153 = shalt.err (!%p1150_p3)
}
 0x1d4   : > { %s1154_s9 = scalar_lea.hbm %s970_s19, 128  ;;  %s1158_s12 = scalar_lea.hbm %s1433_s6, 256 }
 0x1d5   : > { %p1155_p4 = scmp.ne.s32.totalorder %s970_s19, %s1154_s9  ;;  %p1159_p9 = scmp.lt.s32.totalorder %s970_s19, %s1433_s6 }
 0x1d6   : > { %p1160_p10 = scmp.lt.s32.totalorder %s1158_s12, %s1154_s9 }
 0x1d7   : > { %p1156_p7 = pnand %p1155_p4, %p1279_p5 }
 0x1d8   : > { %p1161_p11 = por %p1160_p10, %p1159_p9 }
 0x1d9   : > { %p1157_p8 = pneg %p1156_p7 }
 0x1db   : > { %p1162_p12 = pnand %p1161_p11, %p1157_p8 }
 0x1dd   : > { %1165 = shalt.err (!%p1162_p12)
}
 0x1de   : > { %1064 = dma.vmem_to_hbm [thread:$0]  (%p1279_p5), %s973_s16, 128, %s970_s19, %s958_s20  }
 0x1df PF: > { %p1070_p13 = scmp.ge.s32.totalorder %s1200_s24, 2  ;;  %s984_s15 = sand.u32 1, %s1188_s21  }
 0x1e0   : > { %s985_s17 = scalar_lea.sflag [#allocation3], %s984_s15 }
 0x1e1   : > { %p1067_p0 = pnand %p1070_p13, %p1283_p6 }
 0x1e3   : > { %p1068_p1 = pneg %p1067_p0 }
 0x1e5   : > { %1183 = dma.done.wait (%p1068_p1), %s985_s17, 128  }
 0x1e6   : > { %1185 = vsyncadd (%p1068_p1), %s985_s17, 4294967168  ;;  %p16_p2 = scmp.ge.s32.totalorder %s1266_s27, 4   ;;  %s1436_s21 = smov %s1192_s22 }
 0x1e7   : > { %s1437_s22 = smov %s1196_s23  ;;  %s1438_s23 = smov %s1277_s30 }
 0x1e8   : > { %s1439_s24 = smov %s1266_s27  ;;  %18 = sbr.rel (!%p16_p2) target bundleno = 3 (0x3), region = 79 }
 0x1ed   :  { %990 = vsyncpa [#allocation3], 1 }
 0x1ee   :  { %992 = vsyncpa [#allocation3 + $0x1], 1 }

</bundles_post_ra>
